<compile_context>
chip_gen: v7x
topology: tpu7x:2x2x1
jax: 0.10.0
libtpu: 0.0.40
codegen_flags: <defaults>
</compile_context>

<pallas_src>
import jax
import jax.numpy as jnp
from jax import lax
from jax.experimental import pallas as pl
from jax.experimental.pallas import tpu as pltpu


def _round_up(v, m):
    return ((v + m - 1) // m) * m


def _choose_tile(n, batch_tile):
    """Pick a lane-dense batch tile (multiple of 128) and the grid size."""
    lanes = 128
    batch_tile = max(lanes, _round_up(int(batch_tile), lanes))
    n_lanes = _round_up(max(int(n), 1), lanes)
    num_tiles = pl.cdiv(n_lanes, batch_tile)
    # v7x has 2 TensorCores; the "parallel" grid axis only uses both when the
    # grid has >=2 steps.  Split once there is enough work to be worth it
    # (pure no-op on single-TC v5e/v6e: just one extra tiny grid step).
    if num_tiles == 1 and n_lanes >= 16 * lanes:
        num_tiles = 2
    bt = _round_up(pl.cdiv(n_lanes, num_tiles), lanes)
    num_tiles = pl.cdiv(n_lanes, bt)
    return bt, num_tiles


def mlp_kernel(x_ref, w1_ref, b1_ref, w2_ref, b2_ref,
               w3_ref, b3_ref, w4t_ref, b4_ref, o_ref):
    """One batch tile.

    x_ref   : [bt, in_dim]       natural row-major layout (contiguous DMA)
    wN_ref  : [fan_out, fan_in]  PyTorch-native layout (storage dtype)
    w4t_ref : [16, out_dim]      last layer, transposed
    bN_ref  : [fan_out, 1]       f32
    o_ref   : [out_dim, bt]      f32, batch on lanes -> lane-dense stores
    """
    # Layer 1: contract over in_dim with x "transposed" on the MXU feed path:
    # [64, in] x [bt, in] (contracting dim 1 of both) -> [64, bt], f32 acc.
    h = lax.dot_general(w1_ref[...], x_ref[...], (((1,), (1,)), ((), ())),
                        preferred_element_type=jnp.float32)
    h = jnp.maximum(h + b1_ref[...], 0.0)

    # Layer 2: [32, 64] @ [64, bt] -> [32, bt]
    h = jnp.dot(w2_ref[...], h.astype(w2_ref.dtype),
                preferred_element_type=jnp.float32)
    h = jnp.maximum(h + b2_ref[...], 0.0)

    # Layer 3: [16, 32] @ [32, bt] -> [16, bt]
    h = jnp.dot(w3_ref[...], h.astype(w3_ref.dtype),
                preferred_element_type=jnp.float32)
    h = jnp.maximum(h + b3_ref[...], 0.0)

    # Layer 4: contraction over 16 features.  For out_dim == 1 a full MXU pass
    # for a 1-wide result is wasteful; VPU multiply + sublane (XLU) reduce.
    w4 = w4t_ref[...].astype(jnp.float32)                     # [16, out_dim]
    if w4t_ref.shape[1] == 1:
        out = jnp.sum(h * w4, axis=0, keepdims=True)          # [1, bt]
    else:
        out = lax.dot_general(w4, h, (((0,), (0,)), ((), ())),
                              preferred_element_type=jnp.float32)
    o_ref[...] = (out + b4_ref[...]).astype(o_ref.dtype)


def mlp_forward(x, params, *, batch_tile=16384):
    """x: [N, input_dim] (f32 or bf16). Returns [N, output_dim] f32,
    matching PyTorch Model.forward (bf16 x/weights halve HBM traffic;
    accumulation is always f32)."""
    n, in_dim = x.shape
    out_dim = params["w4"].shape[0]

    bt, num_tiles = _choose_tile(n, batch_tile)
    n_pad = bt * num_tiles   # output is padded to full blocks (tiny array);
                             # x itself is NOT padded: the edge block reads
                             # unspecified rows whose (independent) output
                             # columns land in the padding and are sliced off.

    w1, w2, w3 = params["w1"], params["w2"], params["w3"]
    w4t = params["w4"].T                                       # [16, out_dim]
    b1 = params["b1"].astype(jnp.float32).reshape(-1, 1)
    b2 = params["b2"].astype(jnp.float32).reshape(-1, 1)
    b3 = params["b3"].astype(jnp.float32).reshape(-1, 1)
    b4 = params["b4"].astype(jnp.float32).reshape(-1, 1)

    def resident(arr):
        # Full-array block with constant index_map -> DMA'd once, stays in
        # VMEM across every batch tile (all params together are ~13 KB).
        return pl.BlockSpec(arr.shape, lambda i: (0, 0))

    param_bytes = sum(int(a.size) * a.dtype.itemsize
                      for a in (w1, b1, w2, b2, w3, b3, w4t, b4))
    cost = pl.CostEstimate(
        flops=2 * n_pad * (in_dim * 64 + 64 * 32 + 32 * 16 + 16 * out_dim),
        transcendentals=0,
        bytes_accessed=int(x.size) * x.dtype.itemsize
                       + n_pad * out_dim * 4 + param_bytes)

    out_t = pl.pallas_call(
        mlp_kernel,
        out_shape=jax.ShapeDtypeStruct((out_dim, n_pad), jnp.float32),
        grid=(num_tiles,),
        in_specs=[pl.BlockSpec((bt, in_dim), lambda i: (i, 0)),
                  resident(w1), resident(b1),
                  resident(w2), resident(b2),
                  resident(w3), resident(b3),
                  resident(w4t), resident(b4)],
        out_specs=pl.BlockSpec((out_dim, bt), lambda i: (0, i)),
        compiler_params=pltpu.CompilerParams(
            dimension_semantics=("parallel",),
            vmem_limit_bytes=48 * 1024 * 1024),
        cost_estimate=cost,
    )(x, w1, b1, w2, b2, w3, b3, w4t, b4)

    return out_t[:, :n].T                                      # [N, out_dim]


def init_params(key, input_dim, output_dim, dtype=jnp.float32):
    """PyTorch-style nn.Linear init; weights stored native [fan_out, fan_in]."""
    dims = [(input_dim, 64), (64, 32), (32, 16), (16, output_dim)]
    params = {}
    for i, (fan_in, fan_out) in enumerate(dims, start=1):
        key, kw, kb = jax.random.split(key, 3)
        bound = 1.0 / (fan_in ** 0.5)
        params[f"w{i}"] = jax.random.uniform(
            kw, (fan_out, fan_in), jnp.float32, -bound, bound).astype(dtype)
        # Biases stay f32: post-matmul math is always f32 (v5e has no bf16 VPU).
        params[f"b{i}"] = jax.random.uniform(
            kb, (fan_out,), jnp.float32, -bound, bound)
    return params


def mlp_reference(x, params):
    """Pure-JAX reference matching the PyTorch forward (x @ W.T + b)."""
    h = x
    for i in (1, 2, 3):
        h = jnp.maximum(h @ params[f"w{i}"].T + params[f"b{i}"], 0.0)
    return h @ params["w4"].T + params["b4"]


if __name__ == "__main__":
    key = jax.random.PRNGKey(0)
    batch, input_dim, output_dim = 8, 9, 1   # kaggle-bike style feature count

    key, kx, kmid, kbig = jax.random.split(key, 4)
    x = jax.random.normal(kx, (batch, input_dim), jnp.float32)
    params = init_params(key, input_dim, output_dim, dtype=jnp.float32)

    # --- f32 path, single tile (tight numerical check) ---
    out = jax.block_until_ready(mlp_forward(x, params))
    ref = mlp_reference(x, params)
    assert out.shape == (batch, output_dim)
    assert jnp.allclose(out, ref, atol=1e-4, rtol=1e-4)

    # --- multi-tile grid path with an unaligned batch (tiling + edge block) ---
    x_big = jax.random.normal(kbig, (300, input_dim), jnp.float32)
    out_big = jax.block_until_ready(mlp_forward(x_big, params, batch_tile=128))
    ref_big = mlp_reference(x_big, params)
    assert out_big.shape == (300, output_dim)
    assert jnp.allclose(out_big, ref_big, atol=1e-4, rtol=1e-4)

    # --- default-tile path that triggers the >=2-tile split (dual-TC on v7x) ---
    x_mid = jax.random.normal(kmid, (2500, input_dim), jnp.float32)
    out_mid = jax.block_until_ready(mlp_forward(x_mid, params))
    ref_mid = mlp_reference(x_mid, params)
    assert out_mid.shape == (2500, output_dim)
    assert jnp.allclose(out_mid, ref_mid, atol=1e-4, rtol=1e-4)

    # --- bf16-storage path (halves HBM traffic on v6e/v7x; f32 accumulate) ---
    params_bf16 = {k: (v.astype(jnp.bfloat16) if k.startswith("w") else v)
                   for k, v in params.items()}
    x_bf16 = x.astype(jnp.bfloat16)
    out_bf = jax.block_until_ready(mlp_forward(x_bf16, params_bf16))
    params_bf_as_f32 = {k: v.astype(jnp.float32) for k, v in params_bf16.items()}
    ref_bf = mlp_reference(x_bf16.astype(jnp.float32), params_bf_as_f32)
    assert jnp.allclose(out_bf, ref_bf, atol=5e-2, rtol=5e-2)

    print("KERNEL_OK")
</pallas_src>

<mosaic_0001>
module attributes {stable_mosaic.version = 11 : i64} {
  func.func @mlp_kernel(%arg0: i32, %arg1: memref<128x9xf32, #tpu.memory_space<vmem>>, %arg2: memref<64x9xf32, #tpu.memory_space<vmem>>, %arg3: memref<64x1xf32, #tpu.memory_space<vmem>>, %arg4: memref<32x64xf32, #tpu.memory_space<vmem>>, %arg5: memref<32x1xf32, #tpu.memory_space<vmem>>, %arg6: memref<16x32xf32, #tpu.memory_space<vmem>>, %arg7: memref<16x1xf32, #tpu.memory_space<vmem>>, %arg8: memref<16x1xf32, #tpu.memory_space<vmem>>, %arg9: memref<1x1xf32, #tpu.memory_space<vmem>>, %arg10: memref<1x128xf32, #tpu.memory_space<vmem>>) attributes {dimension_semantics = [#tpu.dimension_semantics<parallel>], iteration_bounds = array<i64: 1>, scalar_prefetch = 0 : i64, scratch_operands = 0 : i64, tpu.core_type = #tpu.core_type<tc>, window_params = [{transform_indices = @transform_0, window_bounds = array<i64: 128, 9>}, {pipeline_mode = #tpu.pipeline_mode<synchronous>, transform_indices = @transform_1, window_bounds = array<i64: 64, 9>}, {pipeline_mode = #tpu.pipeline_mode<synchronous>, transform_indices = @transform_2, window_bounds = array<i64: 64, 1>}, {pipeline_mode = #tpu.pipeline_mode<synchronous>, transform_indices = @transform_3, window_bounds = array<i64: 32, 64>}, {pipeline_mode = #tpu.pipeline_mode<synchronous>, transform_indices = @transform_4, window_bounds = array<i64: 32, 1>}, {pipeline_mode = #tpu.pipeline_mode<synchronous>, transform_indices = @transform_5, window_bounds = array<i64: 16, 32>}, {pipeline_mode = #tpu.pipeline_mode<synchronous>, transform_indices = @transform_6, window_bounds = array<i64: 16, 1>}, {pipeline_mode = #tpu.pipeline_mode<synchronous>, transform_indices = @transform_7, window_bounds = array<i64: 16, 1>}, {pipeline_mode = #tpu.pipeline_mode<synchronous>, transform_indices = @transform_8, window_bounds = array<i64: 1, 1>}, {transform_indices = @transform_9, window_bounds = array<i64: 1, 128>}]} {
    %c0 = arith.constant 0 : index
    %c0_0 = arith.constant 0 : index
    %0 = vector.load %arg2[%c0, %c0_0] : memref<64x9xf32, #tpu.memory_space<vmem>>, vector<64x9xf32>
    %c0_1 = arith.constant 0 : index
    %c0_2 = arith.constant 0 : index
    %1 = vector.load %arg1[%c0_1, %c0_2] : memref<128x9xf32, #tpu.memory_space<vmem>>, vector<128x9xf32>
    %cst = arith.constant dense<0.000000e+00> : vector<64x128xf32>
    %2 = tpu.matmul %0, %1, %cst {dimension_numbers = #tpu.dot_dimension_numbers<[1], [1], [0], [0], [0, 0, 1, 0], [], []>} : vector<64x9xf32>, vector<128x9xf32>, vector<64x128xf32> -> vector<64x128xf32>
    %c0_3 = arith.constant 0 : index
    %c0_4 = arith.constant 0 : index
    %3 = vector.load %arg3[%c0_3, %c0_4] : memref<64x1xf32, #tpu.memory_space<vmem>>, vector<64x1xf32>
    %4 = vector.broadcast %3 : vector<64x1xf32> to vector<64x128xf32>
    %5 = arith.addf %2, %4 : vector<64x128xf32>
    %cst_5 = arith.constant 0.000000e+00 : f32
    %6 = vector.broadcast %cst_5 : f32 to vector<64x128xf32>
    %7 = arith.maximumf %5, %6 : vector<64x128xf32>
    %c0_6 = arith.constant 0 : index
    %c0_7 = arith.constant 0 : index
    %8 = vector.load %arg4[%c0_6, %c0_7] : memref<32x64xf32, #tpu.memory_space<vmem>>, vector<32x64xf32>
    %cst_8 = arith.constant dense<0.000000e+00> : vector<32x128xf32>
    %9 = tpu.matmul %8, %7, %cst_8 {dimension_numbers = #tpu.dot_dimension_numbers<[1], [0], [0], [1], [0, 0, 1, 1], [], []>} : vector<32x64xf32>, vector<64x128xf32>, vector<32x128xf32> -> vector<32x128xf32>
    %c0_9 = arith.constant 0 : index
    %c0_10 = arith.constant 0 : index
    %10 = vector.load %arg5[%c0_9, %c0_10] : memref<32x1xf32, #tpu.memory_space<vmem>>, vector<32x1xf32>
    %11 = vector.broadcast %10 : vector<32x1xf32> to vector<32x128xf32>
    %12 = arith.addf %9, %11 : vector<32x128xf32>
    %cst_11 = arith.constant 0.000000e+00 : f32
    %13 = vector.broadcast %cst_11 : f32 to vector<32x128xf32>
    %14 = arith.maximumf %12, %13 : vector<32x128xf32>
    %c0_12 = arith.constant 0 : index
    %c0_13 = arith.constant 0 : index
    %15 = vector.load %arg6[%c0_12, %c0_13] : memref<16x32xf32, #tpu.memory_space<vmem>>, vector<16x32xf32>
    %cst_14 = arith.constant dense<0.000000e+00> : vector<16x128xf32>
    %16 = tpu.matmul %15, %14, %cst_14 {dimension_numbers = #tpu.dot_dimension_numbers<[1], [0], [0], [1], [0, 0, 1, 1], [], []>} : vector<16x32xf32>, vector<32x128xf32>, vector<16x128xf32> -> vector<16x128xf32>
    %c0_15 = arith.constant 0 : index
    %c0_16 = arith.constant 0 : index
    %17 = vector.load %arg7[%c0_15, %c0_16] : memref<16x1xf32, #tpu.memory_space<vmem>>, vector<16x1xf32>
    %18 = vector.broadcast %17 : vector<16x1xf32> to vector<16x128xf32>
    %19 = arith.addf %16, %18 : vector<16x128xf32>
    %cst_17 = arith.constant 0.000000e+00 : f32
    %20 = vector.broadcast %cst_17 : f32 to vector<16x128xf32>
    %21 = arith.maximumf %19, %20 : vector<16x128xf32>
    %c0_18 = arith.constant 0 : index
    %c0_19 = arith.constant 0 : index
    %22 = vector.load %arg8[%c0_18, %c0_19] : memref<16x1xf32, #tpu.memory_space<vmem>>, vector<16x1xf32>
    %23 = vector.broadcast %22 : vector<16x1xf32> to vector<16x128xf32>
    %24 = arith.mulf %21, %23 : vector<16x128xf32>
    %cst_20 = arith.constant dense<0.000000e+00> : vector<128xf32>
    %25 = vector.multi_reduction <add>, %24, %cst_20 [0] : vector<16x128xf32> to vector<128xf32>
    %26 = vector.shape_cast %25 : vector<128xf32> to vector<1x128xf32>
    %c0_21 = arith.constant 0 : index
    %c0_22 = arith.constant 0 : index
    %27 = vector.load %arg9[%c0_21, %c0_22] : memref<1x1xf32, #tpu.memory_space<vmem>>, vector<1x1xf32>
    %28 = vector.broadcast %27 : vector<1x1xf32> to vector<1x128xf32>
    %29 = arith.addf %26, %28 : vector<1x128xf32>
    %c0_23 = arith.constant 0 : index
    %c0_24 = arith.constant 0 : index
    %30 = vector.load %arg10[%c0_23, %c0_24] : memref<1x128xf32, #tpu.memory_space<vmem>>, vector<1x128xf32>
    tpu.vector_store %arg10[%c0_23, %c0_24], %29 {strides = array<i32>} : memref<1x128xf32, #tpu.memory_space<vmem>>, vector<1x128xf32>,
    return
  }
  func.func @transform_0(%arg0: i32) -> (i32, i32) {
    %c0_i32 = arith.constant 0 : i32
    %c0_i32_0 = arith.constant 0 : i32
    return %arg0, %c0_i32 : i32, i32
  }
  func.func @transform_1(%arg0: i32) -> (i32, i32) {
    %c0_i32 = arith.constant 0 : i32
    %c0_i32_0 = arith.constant 0 : i32
    %c0_i32_1 = arith.constant 0 : i32
    return %c0_i32, %c0_i32_0 : i32, i32
  }
  func.func @transform_2(%arg0: i32) -> (i32, i32) {
    %c0_i32 = arith.constant 0 : i32
    %c0_i32_0 = arith.constant 0 : i32
    %c0_i32_1 = arith.constant 0 : i32
    return %c0_i32, %c0_i32_0 : i32, i32
  }
  func.func @transform_3(%arg0: i32) -> (i32, i32) {
    %c0_i32 = arith.constant 0 : i32
    %c0_i32_0 = arith.constant 0 : i32
    %c0_i32_1 = arith.constant 0 : i32
    return %c0_i32, %c0_i32_0 : i32, i32
  }
  func.func @transform_4(%arg0: i32) -> (i32, i32) {
    %c0_i32 = arith.constant 0 : i32
    %c0_i32_0 = arith.constant 0 : i32
    %c0_i32_1 = arith.constant 0 : i32
    return %c0_i32, %c0_i32_0 : i32, i32
  }
  func.func @transform_5(%arg0: i32) -> (i32, i32) {
    %c0_i32 = arith.constant 0 : i32
    %c0_i32_0 = arith.constant 0 : i32
    %c0_i32_1 = arith.constant 0 : i32
    return %c0_i32, %c0_i32_0 : i32, i32
  }
  func.func @transform_6(%arg0: i32) -> (i32, i32) {
    %c0_i32 = arith.constant 0 : i32
    %c0_i32_0 = arith.constant 0 : i32
    %c0_i32_1 = arith.constant 0 : i32
    return %c0_i32, %c0_i32_0 : i32, i32
  }
  func.func @transform_7(%arg0: i32) -> (i32, i32) {
    %c0_i32 = arith.constant 0 : i32
    %c0_i32_0 = arith.constant 0 : i32
    %c0_i32_1 = arith.constant 0 : i32
    return %c0_i32, %c0_i32_0 : i32, i32
  }
  func.func @transform_8(%arg0: i32) -> (i32, i32) {
    %c0_i32 = arith.constant 0 : i32
    %c0_i32_0 = arith.constant 0 : i32
    %c0_i32_1 = arith.constant 0 : i32
    return %c0_i32, %c0_i32_0 : i32, i32
  }
  func.func @transform_9(%arg0: i32) -> (i32, i32) {
    %c0_i32 = arith.constant 0 : i32
    %c0_i32_0 = arith.constant 0 : i32
    return %c0_i32, %arg0 : i32, i32
  }
}

</mosaic_0001>

<bundles_post_ra>
// kernel: tpu_custom_call.1
= control target key start
LH: loop header
LB: loop body
LE: loop exit
PB: predicated region body
PF: predicated region fallthrough
CT: control target
= control target key end

     0   :  { %s1074_s0 = inlined_call_operand.vmem [shape: f32[8,9], index: 0, kind: input, shape index: {}]   ;;  %s1075_s1 = inlined_call_operand.vmem [shape: f32[64,9], index: 1, kind: input, shape index: {}]   ;;  %s1076_s2 = inlined_call_operand.vmem [shape: f32[64,1], index: 2, kind: input, shape index: {}]   ;;  %s1077_s3 = inlined_call_operand.vmem [shape: f32[32,64], index: 3, kind: input, shape index: {}]   ;;  %s1078_s4 = inlined_call_operand.vmem [shape: f32[32,1], index: 4, kind: input, shape index: {}]   ;;  %s1079_s5 = inlined_call_operand.vmem [shape: f32[16,32], index: 5, kind: input, shape index: {}]   ;;  %s1080_s6 = inlined_call_operand.vmem [shape: f32[16,1], index: 6, kind: input, shape index: {}]   ;;  %s1081_s7 = inlined_call_operand.vmem [shape: f32[16,1], index: 7, kind: input, shape index: {}]   ;;  %s1082_s8 = inlined_call_operand.<no memory space> [shape: f32[1,1], index: 8, kind: input, shape index: {}]   ;;  %s1083_s9 = inlined_call_operand.hbm [shape: f32[1,128], index: 9, kind: output, shape index: {}]  }
   0x1   :  { %v14_v0 = vstv %s1082_s8 }
   0x2   :  { %15 = vst [vmem:[#allocation2] sm:$0x1] %v14_v0 }
   0x3   :  { %v43_v1 = vld [vmem:[%s1074_s0] sm:$0xff]  ;;  %v44_v2 = vld [vmem:[%s1074_s0 + $0x8] sm:$0xff]  ;;  %vm107_vm0 = vcmask 72704   ;;  %v45_v3 = vld [vmem:[%s1074_s0 + $0x10] sm:$0xff]  ;;  %v817_v7 = vmov 0  }
   0x4   :  { %v717_v4 = vpack.c.bf16 %v44_v2, %v43_v1  ;;  %vm883_vm1 = vmpackc.low %vm107_vm0, %vm107_vm0  ;;  %v46_v6 = vld [vmem:[%s1074_s0 + $0x18] sm:$0xff]  ;;  %791 = vset.pattern.permute.xlu0 %v817_v7  ;;  %792 = vset.pattern.permute.xlu1 %v817_v7  ;;  %v35_v9 = vld [vmem:[%s1075_s1] sm:$0xff] }
   0x5   :  { %v723_v8 = vpack.c.bf16 %v46_v6, %v45_v3  ;;  %v47_v10 = vld [vmem:[%s1074_s0 + $0x20] sm:$0xff]  ;;  %v48_v11 = vld [vmem:[%s1074_s0 + $0x28] sm:$0xff]  ;;  %672 = vmatprep.mubr.msk.f32.mxu0 %vm107_vm0, %v35_v9  ;;  %v61_v14 = vld [vmem:[%s1076_s2 + $0x10] sm:$0xff] }
   0x6   :  { %719 = vmatprep.subr.msk.bf16.mxu0 %vm883_vm1, %v717_v4  ;;  %v59_v12 = vld [vmem:[%s1076_s2] sm:$0xff]  ;;  %v729_v13 = vpack.c.bf16 %v48_v11, %v47_v10  ;;  %v60_v15 = vld [vmem:[%s1076_s2 + $0x8] sm:$0xff]  ;;  %79 = vperm.xlu1 %792, %v61_v14   ;;  %v62_v16 = vld [vmem:[%s1076_s2 + $0x18] sm:$0xff] }
   0x7   :  { %722 = vmatpush3.bf16.xpose.msk.msra.mxu0 %vm883_vm1, %v717_v4  ;;  %69 = vperm.xlu0 %791, %v59_v12   ;;  %v49_v17 = vld [vmem:[%s1074_s0 + $0x30] sm:$0xff]  ;;  %v50_v18 = vld [vmem:[%s1074_s0 + $0x38] sm:$0xff]  ;;  %v63_v19 = vld [vmem:[%s1076_s2 + $0x20] sm:$0xff] }
   0x8   :  { %725 = vmatprep.subr.msk.bf16.mxu0 %vm883_vm1, %v723_v8 }
   0xa   :  { %84 = vperm.xlu1 %792, %v62_v16  }
   0xb   :  { %74 = vperm.xlu0 %791, %v60_v15  }
   0xf   :  { %728 = vmatpush3.bf16.xpose.msk.msra.mxu0 %vm883_vm1, %v723_v8 }
  0x10   :  { %731 = vmatprep.subr.msk.bf16.mxu0 %vm883_vm1, %v729_v13 }
  0x11   :  { %16 = vsyncpa [#allocation4], 0  ;;  %v64_v20 = vld [vmem:[%s1076_s2 + $0x28] sm:$0xff]  ;;  %v735_v21 = vpack.c.bf16 %v50_v18, %v49_v17  ;;  %89 = vperm.xlu0 %791, %v63_v19   ;;  %v65_v22 = vld [vmem:[%s1076_s2 + $0x30] sm:$0xff]  ;;  %vm321_vm2 = vcmask 523264   ;;  %vm437_vm3 = vcmask 261120  }
  0x12   :  { %94 = vperm.xlu1 %792, %v64_v20   ;;  %v66_v23 = vld [vmem:[%s1076_s2 + $0x38] sm:$0xff]  ;;  %v51_v24 = vld [vmem:[%s1074_s0 + $0x40] sm:$0xff]  ;;  %v52_v25 = vld [vmem:[%s1074_s0 + $0x48] sm:$0xff] }
  0x13   :  { %v297_v26 = vld [vmem:[%s1078_s4] sm:$0xff]  ;;  %v298_v27 = vld [vmem:[%s1078_s4 + $0x8] sm:$0xff]  ;;  %v741_v28 = vpack.c.bf16 %v52_v25, %v51_v24  ;;  %v299_v29 = vld [vmem:[%s1078_s4 + $0x10] sm:$0xff] }
  0x14   :  { %v300_v30 = vld [vmem:[%s1078_s4 + $0x18] sm:$0xff]  ;;  %v53_v31 = vld [vmem:[%s1074_s0 + $0x50] sm:$0xff]  ;;  %v425_v33 = vld [vmem:[%s1080_s6] sm:$0xff] }
  0x15   :  { %99 = vperm.xlu0 %791, %v65_v22   ;;  %v54_v32 = vld [vmem:[%s1074_s0 + $0x58] sm:$0xff]  ;;  %v426_v34 = vld [vmem:[%s1080_s6 + $0x8] sm:$0xff]  ;;  %v521_v36 = vld [vmem:[%s1081_s7] sm:$0xff] }
  0x16   :  { %104 = vperm.xlu1 %792, %v66_v23   ;;  %v747_v35 = vpack.c.bf16 %v54_v32, %v53_v31  ;;  %v522_v37 = vld [vmem:[%s1081_s7 + $0x8] sm:$0xff]  ;;  %v55_v38 = vld [vmem:[%s1074_s0 + $0x60] sm:$0xff]  ;;  %v57_v42 = vld [vmem:[%s1074_s0 + $0x70] sm:$0xff] }
  0x17   :  { %734 = vmatpush3.bf16.xpose.msk.msra.mxu0 %vm883_vm1, %v729_v13  ;;  %v56_v39 = vld [vmem:[%s1074_s0 + $0x68] sm:$0xff]  ;;  %v542_v40 = vld [vmem:[#allocation2] sm:$0x1]  ;;  %v58_v43 = vld [vmem:[%s1074_s0 + $0x78] sm:$0xff] }
  0x18   :  { %737 = vmatprep.subr.msk.bf16.mxu0 %vm883_vm1, %v735_v21  ;;  %v753_v41 = vpack.c.bf16 %v56_v39, %v55_v38  ;;  %v759_v44 = vpack.c.bf16 %v58_v43, %v57_v42  ;;  %v36_v45 = vld [vmem:[%s1075_s1 + $0x8] sm:$0xff]  ;;  %v37_v46 = vld [vmem:[%s1075_s1 + $0x10] sm:$0xff]  ;;  %v38_v47 = vld [vmem:[%s1075_s1 + $0x18] sm:$0xff] }
  0x19   :  { %303 = vperm.xlu0 %791, %v297_v26   ;;  %v39_v48 = vld [vmem:[%s1075_s1 + $0x20] sm:$0xff]  ;;  %v40_v49 = vld [vmem:[%s1075_s1 + $0x28] sm:$0xff]  ;;  %v41_v50 = vld [vmem:[%s1075_s1 + $0x30] sm:$0xff] }
  0x1a   :  { %308 = vperm.xlu1 %792, %v298_v27   ;;  %v42_v51 = vld [vmem:[%s1075_s1 + $0x38] sm:$0xff]  ;;  %v293_v52 = vld [vmem:[%s1077_s3] sm:$0xff]  ;;  %v294_v25 = vld [vmem:[%s1077_s3 + $0x8] sm:$0xff] }
  0x1b   :  { %700 = vmatprep.mubr.msk.f32.mxu1 %vm321_vm2, %v293_v52  ;;  %v295_v26 = vld [vmem:[%s1077_s3 + $0x10] sm:$0xff]  ;;  %v296_v27 = vld [vmem:[%s1077_s3 + $0x18] sm:$0xff] }
  0x1d   :  { %313 = vperm.xlu0 %791, %v299_v29  }
  0x1e   :  { %318 = vperm.xlu1 %792, %v300_v30  }
  0x1f   :  { %740 = vmatpush3.bf16.xpose.msk.msra.mxu0 %vm883_vm1, %v735_v21 }
  0x20   :  { %743 = vmatprep.subr.msk.bf16.mxu0 %vm883_vm1, %v741_v28 }
  0x21   :  { %429 = vperm.xlu0 %791, %v425_v33  }
  0x22   :  { %434 = vperm.xlu1 %792, %v426_v34  }
  0x25   :  { %525 = vperm.xlu0 %791, %v521_v36  }
  0x26   :  { %530 = vperm.xlu1 %792, %v522_v37  }
  0x27   :  { %746 = vmatpush3.bf16.xpose.msk.msra.mxu0 %vm883_vm1, %v741_v28  ;;  %v423_v28 = vld [vmem:[%s1079_s5] sm:$0xff] }
  0x28   :  { %749 = vmatprep.subr.msk.bf16.mxu0 %vm883_vm1, %v747_v35 }
  0x29   :  { %545 = vperm.xlu0 %791, %v542_v40  }
  0x2f   :  { %752 = vmatpush3.bf16.xpose.msk.msra.mxu0 %vm883_vm1, %v747_v35 }
  0x30   :  { %755 = vmatprep.subr.msk.bf16.mxu0 %vm883_vm1, %v753_v41 }
  0x37   :  { %758 = vmatpush3.bf16.xpose.msk.msra.mxu0 %vm883_vm1, %v753_v41 }
  0x38   :  { %761 = vmatprep.subr.msk.bf16.mxu0 %vm883_vm1, %v759_v44 }
  0x3f   :  { %764 = vmatpush3.bf16.xpose.msk.msra.mxu0 %vm883_vm1, %v759_v44 }
  0x46   :  { %673 = vmatmul.mubr.msk.f32.vlgmr.msra.gmra.mrb[0].mxu0 %vm107_vm0, %v36_v45 }
  0x47   :  { %675 = vmatprep.mubr.msk.f32.mxu0 %vm107_vm0, %v37_v46 }
  0x4a   :  { %676 = vmatmul.mubr.msk.f32.gmra.mrb[2].mxu0 %vm107_vm0, %v38_v47  ;;  %v424_v47 = vld [vmem:[%s1079_s5 + $0x8] sm:$0xff]  ;;  %s818_s5 = smov [#allocation3]  }
  0x4b   :  { %678 = vmatprep.mubr.msk.f32.mxu0 %vm107_vm0, %v39_v48  ;;  %s560_s25 = sshll.u32 %s818_s5, 4  ;;  %s561_s25 = int_to_ptr.vmem [resolvable:$true] %s560_s25 }
  0x4c   :  { %s793_s26 = scalar_lea.vmem %s561_s25, 16  ;;  %s797_s27 = scalar_lea.vmem %s561_s25, 32 }
  0x4d   :  { %p794_p0 = scmp.ne.s32.totalorder %s561_s25, %s793_s26  ;;  %p798_p1 = scmp.lt.s32.totalorder %s561_s25, %s561_s25 }
  0x4e   :  { %679 = vmatmul.mubr.msk.f32.gmra.mrb[4].mxu0 %vm107_vm0, %v40_v49  ;;  %p799_p2 = scmp.lt.s32.totalorder %s797_s27, %s793_s26 }
  0x4f   :  { %681 = vmatprep.mubr.msk.f32.mxu0 %vm107_vm0, %v41_v50 }
  0x50   :  { %p800_p3 = por %p799_p2, %p798_p1 }
  0x52   :  { %682 = vmatmul.mubr.msk.f32.gmra.mrb[6].mxu0 %vm107_vm0, %v42_v51  ;;  %p801_p4 = pnand %p800_p3, %p794_p0 }
  0x85   :  { %v80_v54 = vpop.permute.xlu1 %79 }
  0x86   :  { %v70_v53 = vpop.permute.xlu0 %69 }
  0x89   :  { %v85_v56 = vpop.permute.xlu1 %84 }
  0x8a   :  { %v75_v55 = vpop.permute.xlu0 %74 }
  0x90   :  { %v90_v5 = vpop.permute.xlu0 %89 }
  0x91   :  { %v95_v2 = vpop.permute.xlu1 %94 }
  0x94   :  { %v100_v17 = vpop.permute.xlu0 %99 }
  0x95   :  { %v105_v14 = vpop.permute.xlu1 %104 }
  0x98   :  { %v304_v30 = vpop.permute.xlu0 %303 }
  0x99   :  { %v309_v29 = vpop.permute.xlu1 %308 }
  0x9c   :  { %v314_v39 = vpop.permute.xlu0 %313 }
  0x9d   :  { %v319_v36 = vpop.permute.xlu1 %318 }
  0xa0   :  { %v430_v49 = vpop.permute.xlu0 %429 }
  0xa1   :  { %v435_v48 = vpop.permute.xlu1 %434 }
 0x119   :  { %v674_v57 = vpop.f32.mrb[0].mxu0 }
 0x11a   :  { %v252_v58 = vadd.f32 %v674_v57, %v75_v55  ;;  %v246_v59 = vpop.f32.mrb[1].mxu0  ;;  %v531_v55 = vpop.permute.xlu1 %530 }
 0x11b   :  { %v247_v60 = vadd.f32 %v246_v59, %v70_v53  ;;  %v526_v57 = vpop.permute.xlu0 %525 }
 0x11c   :  { %v286_v61 = vmax.f32 %v252_v58, 0.0 }
 0x11d   :  { %v285_v62 = vmax.f32 %v247_v60, 0.0  ;;  %v677_v63 = vpop.f32.mrb[2].mxu0  ;;  %v548_v60 = vlaneseq }
 0x11e   :  { %v262_v0 = vadd.f32 %v677_v63, %v85_v56  ;;  %v256_v1 = vpop.f32.mrb[3].mxu0 }
 0x11f   :  { %v257_v3 = vadd.f32 %v256_v1, %v80_v54  ;;  %v765_v4 = vpack.c.bf16 %v286_v61, %v285_v62  ;;  %v549_v63 = vshrl.u32 %v548_v60, 7 }
 0x120   :  { %v288_v6 = vmax.f32 %v262_v0, 0.0 }
 0x121   :  { %v287_v7 = vmax.f32 %v257_v3, 0.0  ;;  %v680_v8 = vpop.f32.mrb[4].mxu0  ;;  %766 = vmatprep.subr.bf16.mxu1 %v765_v4 }
 0x122   :  { %v272_v9 = vadd.f32 %v680_v8, %v95_v2  ;;  %v266_v10 = vpop.f32.mrb[5].mxu0  ;;  %768 = vmatpush3.bf16.msra.mxu1 %v765_v4  ;;  %v550_v2 = vsub.s32 0, %v549_v63  ;;  %v546_v4 = vpop.permute.xlu0 %545 }
 0x123   :  { %v769_v11 = vpack.c.bf16 %v288_v6, %v287_v7  ;;  %v267_v12 = vadd.f32 %v266_v10, %v90_v5 }
 0x124   :  { %v290_v13 = vmax.f32 %v272_v9, 0.0  ;;  %v551_v6 = vrot.slane %v546_v4, %v550_v2 }
 0x125   :  { %v289_v15 = vmax.f32 %v267_v12, 0.0  ;;  %v683_v16 = vpop.f32.mrb[6].mxu0  ;;  %770 = vmatprep.subr.bf16.mxu1 %v769_v11 }
 0x126   :  { %v282_v18 = vadd.f32 %v683_v16, %v105_v14  ;;  %v276_v19 = vpop.f32.mrb[7].mxu0  ;;  %772 = vmatpush3.bf16.msra.mxu1 %v769_v11 }
 0x127   :  { %v773_v20 = vpack.c.bf16 %v290_v13, %v289_v15  ;;  %v277_v21 = vadd.f32 %v276_v19, %v100_v17 }
 0x128   :  { %v292_v22 = vmax.f32 %v282_v18, 0.0 }
 0x129   :  { %v291_v23 = vmax.f32 %v277_v21, 0.0  ;;  %774 = vmatprep.subr.bf16.mxu1 %v773_v20 }
 0x12a   :  { %776 = vmatpush3.bf16.msra.mxu1 %v773_v20 }
 0x12b   :  { %v777_v24 = vpack.c.bf16 %v292_v22, %v291_v23 }
 0x12d   :  { %778 = vmatprep.subr.bf16.mxu1 %v777_v24 }
 0x12e   :  { %780 = vmatpush3.bf16.msra.mxu1 %v777_v24 }
 0x131   :  { %701 = vmatmul.mubr.msk.f32.vlgmr.msra.gmra.mrb[0].mxu1 %vm321_vm2, %v294_v25 }
 0x132   :  { %703 = vmatprep.mubr.msk.f32.mxu1 %vm321_vm2, %v295_v26 }
 0x135   :  { %704 = vmatmul.mubr.msk.f32.gmra.mrb[2].mxu1 %vm321_vm2, %v296_v27 }
 0x136   :  { %714 = vmatprep.mubr.msk.f32.mxu1 %vm437_vm3, %v423_v28 }
 0x204   :  { %v702_v31 = vpop.f32.mrb[0].mxu1 }
 0x205   :  { %v406_v32 = vadd.f32 %v702_v31, %v309_v29  ;;  %v400_v33 = vpop.f32.mrb[1].mxu1 }
 0x206   :  { %v401_v34 = vadd.f32 %v400_v33, %v304_v30 }
 0x207   :  { %v420_v35 = vmax.f32 %v406_v32, 0.0 }
 0x208   :  { %v419_v37 = vmax.f32 %v401_v34, 0.0  ;;  %v705_v38 = vpop.f32.mrb[2].mxu1 }
 0x209   :  { %v416_v40 = vadd.f32 %v705_v38, %v319_v36  ;;  %v410_v41 = vpop.f32.mrb[3].mxu1 }
 0x20a   :  { %v781_v42 = vpack.c.bf16 %v420_v35, %v419_v37  ;;  %v411_v43 = vadd.f32 %v410_v41, %v314_v39 }
 0x20b   :  { %v422_v44 = vmax.f32 %v416_v40, 0.0 }
 0x20c   :  { %v421_v45 = vmax.f32 %v411_v43, 0.0  ;;  %782 = vmatprep.subr.bf16.mxu1 %v781_v42 }
 0x20d   :  { %784 = vmatpush3.bf16.msra.mxu1 %v781_v42 }
 0x20e   :  { %v785_v46 = vpack.c.bf16 %v422_v44, %v421_v45 }
 0x210   :  { %786 = vmatprep.subr.bf16.mxu1 %v785_v46 }
 0x211   :  { %788 = vmatpush3.bf16.msra.mxu1 %v785_v46 }
 0x214   :  { %715 = vmatmul.mubr.msk.f32.vlgmr.msra.gmra.mrb[4].mxu1 %vm437_vm3, %v424_v47 }
 0x2e7   :  { %v716_v50 = vpop.f32.mrb[4].mxu1 }
 0x2e8   :  { %v516_v51 = vadd.f32 %v716_v50, %v435_v48  ;;  %v510_v52 = vpop.f32.mrb[5].mxu1 }
 0x2e9   :  { %v511_v53 = vadd.f32 %v510_v52, %v430_v49 }
 0x2ea   :  { %v520_v54 = vmax.f32 %v516_v51, 0.0 }
 0x2eb   :  { %v519_v56 = vmax.f32 %v511_v53, 0.0 }
 0x2ec   :  { %v534_v58 = vmul.f32 %v531_v55, %v520_v54 }
 0x2ed   :  { %v533_v59 = vmul.f32 %v526_v57, %v519_v56 }
 0x2ef   :  { %v535_v61 = vadd.f32 %v534_v58, %v533_v59 }
 0x2f1   :  { %v536_v62 = vrot.slane %v535_v61, 4 }
 0x2f3   :  { %v537_v0 = vadd.f32 %v536_v62, %v535_v61 }
 0x2f5   :  { %v538_v1 = vrot.slane %v537_v0, 2 }
 0x2f7   :  { %v539_v3 = vadd.f32 %v538_v1, %v537_v0 }
 0x2f9   :  { %v540_v5 = vrot.slane %v539_v3, 1 }
 0x2fb   :  { %v541_v7 = vadd.f32 %v540_v5, %v539_v3 }
 0x2fd   :  { %v552_v8 = vadd.f32 %v551_v6, %v541_v7 }
 0x2ff   :  { %553 = vst [vmem:[#allocation3] sm:$0x1] %v552_v8 }
 0x300   :  { %804 = shalt.err (!%p801_p4)
}
 0x301   :  { %s805_s29 = scalar_lea.hbm %s1083_s9, 16 }
 0x302   :  { %p806_p5 = scmp.ne.s32.totalorder %s1083_s9, %s805_s29  ;;  %p809_p6 = scmp.lt.u32.totalorder %s805_s29, %s1083_s9 }
 0x304   :  { %p811_p7 = pnand %p809_p6, %p806_p5 }
 0x306   :  { %814 = shalt.err (!%p811_p7)
}
 0x307   :  { %563 = dma.vmem_to_hbm [thread:$0]  %s561_s25, 16, %s1083_s9, [#allocation4]  }
 0x308   :  { %815 = dma.done.wait [#allocation4], 16  }
 0x309   :  { %816 = vsyncadd [#allocation4], 4294967280 }
 0x30a   :  { %567 = vsyncpa [#allocation4], 1 }

</bundles_post_ra>
